<compile_context>
chip_gen: v7x
topology: tpu7x:2x2x1
jax: 0.10.0
libtpu: 0.0.40
codegen_flags: <defaults>
</compile_context>

<pallas_src>
import functools

import jax
import jax.numpy as jnp
from jax import lax
from jax.experimental import pallas as pl
from jax.experimental.pallas import tpu as pltpu


# --------------------------------------------------------------------------
# VMEM-aware tiling helpers (v5e/v6e: 128 MiB physical VMEM, v7x: 64 MiB)
# --------------------------------------------------------------------------
@functools.lru_cache(maxsize=None)
def _vmem_limit_bytes():
    cap = 64 << 20                       # conservative fallback (= v7x physical VMEM)
    try:
        info = pltpu.get_tpu_info()
        cap = int(getattr(info, "vmem_capacity_bytes", cap) or cap)
    except Exception:
        pass
    # never request 100% of physical VMEM: leave headroom for compiler-internal scratch.
    return max(32 << 20, (cap * 85) // 100)


def _pick_tm(n, per_row_bytes, *, fixed_bytes=0, frac=0.6, align=8):
    """Largest row tile (a divisor of n) whose double-buffered window fits the VMEM budget.
    Keeps >= 2 grid steps so v7x's 2nd TensorCore gets work on the 'parallel' grid axis."""
    budget = int(_vmem_limit_bytes() * frac) - int(fixed_bytes)
    cap = max(align, budget // max(1, int(per_row_bytes)))
    if n >= 2 * align:
        cap = min(cap, n // 2)
    cap = min(cap, n)
    for step in (align, 8, 1):
        best, t = 0, step
        while t <= cap:
            if n % t == 0:
                best = t
            t += step
        if best:
            return best
    return n


def _mosaic_params(grid_rank):
    return pltpu.CompilerParams(
        dimension_semantics=("parallel",) * grid_rank,
        vmem_limit_bytes=_vmem_limit_bytes(),
    )


# --------------------------------------------------------------------------
# Pallas kernel 1: tempered softmax slab  [softmax | log-softmax | neg-entropy]  (row-tiled)
#   reference: F.softmax(hidden / temp, 1); torch.log(softmax) used in prox_* — log-softmax
#   is computed directly (no log(softmax) underflow), negent fused in-kernel.
# --------------------------------------------------------------------------
def _softmax_slab_kernel(x_ref, out_ref, *, inv_temp, nclass):
    c = nclass
    x = x_ref[...].astype(jnp.float32) * inv_temp
    m = jnp.max(x, axis=1, keepdims=True)
    lse = jnp.log(jnp.sum(jnp.exp(x - m), axis=1, keepdims=True)) + m
    logsm = x - lse
    sm = jnp.exp(logsm)
    out_ref[:, 0:c] = sm
    out_ref[:, c:2 * c] = logsm
    out_ref[:, 2 * c:2 * c + 1] = jnp.sum(sm * logsm, axis=1, keepdims=True)


def softmax_slab(logits, temp):
    n, c = logits.shape
    tm = _pick_tm(n, per_row_bytes=32 * (2 * c + 2), frac=0.3)
    return pl.pallas_call(
        functools.partial(_softmax_slab_kernel, inv_temp=1.0 / float(temp), nclass=int(c)),
        grid=(n // tm,),
        out_shape=jax.ShapeDtypeStruct((n, 2 * c + 1), jnp.float32),
        in_specs=[pl.BlockSpec((tm, c), lambda i: (i, 0))],
        out_specs=pl.BlockSpec((tm, 2 * c + 1), lambda i: (i, 0)),
        compiler_params=_mosaic_params(1),
    )(logits.astype(jnp.float32))


# --------------------------------------------------------------------------
# Pallas kernel 2: fused prox_1 / prox_2 / JSDiv for BOTH softmax sources + node degree.
#
#   packed = [sm, log_sm, negent | attr_sm, attr_log_sm, attr_negent | ones]   (N, 4C+3)
#   Algebraic identities (pairwise_KL[i,j] = negent[i] - sm[i].log_sm[j]):
#     prox_1[i] = (deg[i]*negent[i] - sm[i].(A@log_sm)[i]) / deg[i]
#     prox_2[i] = (deg[i]*(A@negent)[i] - (A@sm)[i].(A@log_sm)[i]) / (deg[i]*(deg[i]-1))
#     JSDiv[i]  = H( (A@sm)[i]/deg[i] normalized ) + (A@negent)[i]/deg[i]
#     deg       = A @ ones   (last rhs column, f32-exact on the MXU)
#   One (TM,N)@(N,P) matmul per row tile; adjacency streamed as bf16; no NxN intermediates.
# --------------------------------------------------------------------------
def _node_stats_kernel(adj_ref, pk_full_ref, pk_blk_ref, out_ref, *, nclass):
    c = nclass
    h = 2 * c + 1
    a = adj_ref[...].astype(jnp.float32)                                   # bf16 stream -> f32
    ap = jnp.dot(a, pk_full_ref[...], preferred_element_type=jnp.float32)  # (TM, 2h+1)
    deg = ap[:, 2 * h:2 * h + 1]                                           # A @ ones
    pb = pk_blk_ref[...]
    for half in range(2):                                                  # 0: GCN, 1: PCA-attr
        o = half * h
        s_blk = pb[:, o:o + c]
        ne_blk = pb[:, o + 2 * c:o + 2 * c + 1]
        a_s = ap[:, o:o + c]
        a_ls = ap[:, o + c:o + 2 * c]
        a_ne = ap[:, o + 2 * c:o + 2 * c + 1]
        p1 = (deg * ne_blk - jnp.sum(s_blk * a_ls, axis=1, keepdims=True)) / deg
        p2 = (deg * a_ne - jnp.sum(a_s * a_ls, axis=1, keepdims=True)) / (deg * (deg - 1.0))
        t = a_s / deg
        t = t / jnp.sum(t, axis=1, keepdims=True)
        # NOTE: -t*log(t) is NaN when a class mass is exactly 0; the reference does the same
        # and np.nan_to_num then zeroes the whole entry — kept faithful (same for deg<=1).
        js = jnp.sum(-t * jnp.log(t), axis=1, keepdims=True) + a_ne / deg
        base = 3 * half
        out_ref[:, base + 0:base + 1] = p1
        out_ref[:, base + 1:base + 2] = p2
        out_ref[:, base + 2:base + 3] = js
    out_ref[:, 6:7] = deg
    out_ref[:, 7:8] = jnp.zeros_like(deg)


def node_stats_fused(adj_bf16, packed, nclass):
    n = adj_bf16.shape[0]
    p = packed.shape[1]
    tm = _pick_tm(n, per_row_bytes=8 * n + 16 * p + 128,
                  fixed_bytes=8 * n * p, frac=0.7, align=16)
    return pl.pallas_call(
        functools.partial(_node_stats_kernel, nclass=int(nclass)),
        grid=(n // tm,),
        out_shape=jax.ShapeDtypeStruct((n, 8), jnp.float32),
        in_specs=[pl.BlockSpec((tm, n), lambda i: (i, 0)),   # adjacency row tile (bf16 stream)
                  pl.BlockSpec((n, p), lambda i: (0, 0)),    # packed rhs, constant index map
                  pl.BlockSpec((tm, p), lambda i: (i, 0))],  # packed row tile
        out_specs=pl.BlockSpec((tm, 8), lambda i: (i, 0)),
        compiler_params=_mosaic_params(1),
    )(adj_bf16, packed, packed)


# --------------------------------------------------------------------------
# Pallas kernel 3: fully fused meta-gradient sanitization + singleton filter + reductions.
#   Emits per row: best mg over valid (off-diagonal, singleton_mask==1) entries, its column,
#   and min(mg). The wrapper applies the global min-shift and picks the winning edge — no
#   (N,N) mg / mask / final tensors ever hit HBM.  (final[i,j] = (mg - min)*S with S in
#   {1,0,-1}: S=0 entries and the zeroed diagonal are 0, S=-1 entries are <= 0, so the
#   reference argmax is the best S==1 entry when positive, else flat index (0,0).)
# --------------------------------------------------------------------------
def _sanitize_kernel(g_ref, a_ref, nrm_r_ref, nrm_c_ref, d1_r_ref, d1_c_ref,
                     best_ref, col_ref, min_ref, *, tm):
    i = pl.program_id(0)
    g = g_ref[...]                                        # (TM, N) f32 adj_changes gradient
    a = a_ref[...].astype(jnp.float32)                    # (TM, N) 0/1 adjacency (bf16 stream)
    abn_r = 1.0 - nrm_r_ref[...]                          # (TM, 1) abnormal flag, tile rows
    abn_c = 1.0 - nrm_c_ref[...]                          # (1,  N) abnormal flag, all columns
    rows = i * tm + lax.broadcasted_iota(jnp.int32, g.shape, 0)
    cols = lax.broadcasted_iota(jnp.int32, g.shape, 1)
    offdiag = rows != cols
    gs = jnp.where(offdiag, jnp.maximum(g * abn_r * abn_c, 0.0), 0.0)   # sanitized grad >= 0
    mg = gs * (2.0 * a - 1.0)                             # -grad * (-2A + 1); diag == 0
    min_ref[...] = jnp.min(mg, axis=1, keepdims=True)     # per-row candidate for global min
    # singleton mask S = 1 - A*(d1_i + d1_j)  (reference filter_potential_singletons)
    s = 1.0 - a * (d1_r_ref[...] + d1_c_ref[...])
    valid = offdiag & (s > 0.5)
    cand = jnp.where(valid, mg, -jnp.inf)
    best = jnp.max(cand, axis=1, keepdims=True)
    best_ref[...] = best
    idx = jnp.where(cand >= best, cols, g.shape[1])       # first column achieving the max
    col_ref[...] = jnp.min(idx, axis=1, keepdims=True).astype(jnp.int32)


def sanitize_and_select(adj_grad, adj_bf16, normal, deg1):
    n = adj_grad.shape[0]
    tm = _pick_tm(n, per_row_bytes=32 * n, frac=0.7, align=16)
    row_spec = pl.BlockSpec((tm, n), lambda i: (i, 0))
    col_vec = pl.BlockSpec((tm, 1), lambda i: (i, 0))
    row_vec = pl.BlockSpec((1, n), lambda i: (0, 0))
    out_vec = pl.BlockSpec((tm, 1), lambda i: (i, 0))
    return pl.pallas_call(
        functools.partial(_sanitize_kernel, tm=tm),
        grid=(n // tm,),
        out_shape=(jax.ShapeDtypeStruct((n, 1), jnp.float32),   # per-row best valid mg
                   jax.ShapeDtypeStruct((n, 1), jnp.int32),     # its column index
                   jax.ShapeDtypeStruct((n, 1), jnp.float32)),  # per-row min(mg)
        in_specs=[row_spec, row_spec, col_vec, row_vec, col_vec, row_vec],
        out_specs=(out_vec, out_vec, out_vec),
        compiler_params=_mosaic_params(1),
    )(adj_grad, adj_bf16, normal.reshape(n, 1), normal.reshape(1, n),
      deg1.reshape(n, 1), deg1.reshape(1, n))


# --------------------------------------------------------------------------
# Differentiable plain-JAX pieces (needed for the bilevel meta-gradient wrt adj_changes;
# pallas_call has no VJP rule, so this mirrors torch.autograd.grad(create_graph=True)).
# --------------------------------------------------------------------------
def normalize_adj_jax(adj):
    a = adj + jnp.eye(adj.shape[0], dtype=adj.dtype)
    rowsum = a.sum(1)
    r_inv = rowsum ** -0.5
    r_inv = jnp.where(jnp.isinf(r_inv), 0.0, r_inv)
    return r_inv[:, None] * a * r_inv[None, :]


def feature_smoothing_jax(adj, x):
    # modified_adj is symmetric, so (A.T + A)/2 == A; L / L_norm never materialized:
    # trace(X^T R(D-A)R X) = sum(X * r*(rowsum*(r*X) - A@(r*X))).
    rowsum = adj.sum(1)
    r_inv = (rowsum + 0.001) ** -0.5
    r_inv = jnp.where(jnp.isinf(r_inv), 0.0, r_inv)
    y = r_inv[:, None] * x
    lx = r_inv[:, None] * (rowsum[:, None] * y - adj @ y)
    return jnp.sum(x * lx)


def gcn_forward_jax(adj_norm_bf16, x, ws):
    # with_relu=False, with_bias=False (module defaults); bf16 (N,N) stream, f32 accumulation.
    h = x
    for w in ws:
        hw = (h @ w).astype(jnp.bfloat16)
        h = jnp.dot(adj_norm_bf16, hw, preferred_element_type=jnp.float32)
    return h


def inner_train_jax(adj_norm_bf16, x, labels, train_mask, w_init, train_iters, lr, momentum):
    # TODO(synk): torch RNG effects (F.dropout training=True, per-call weight re-init,
    # velocity carry-over between steps) not reproduced: dropout=0, fixed deterministic
    # w_init, zero-initialized velocities each call.
    n = x.shape[0]
    idx = jnp.arange(n)
    ws = [w for w in w_init]
    vs = [jnp.zeros_like(w) for w in ws]

    def loss_and_logits(ws_):
        logits = gcn_forward_jax(adj_norm_bf16, x, ws_)
        logp = jax.nn.log_softmax(logits, axis=1)
        loss = -jnp.sum(train_mask * logp[idx, labels]) / jnp.sum(train_mask)
        return loss, logits

    logits_prev = None
    for _ in range(train_iters):
        (_, logits_prev), grads = jax.value_and_grad(loss_and_logits, has_aux=True)(ws)
        vs = [momentum * v + g for v, g in zip(vs, grads)]
        ws = [w - lr * v for w, v in zip(ws, vs)]
    # ws          : weights after the final SGD step (used for the meta-gradient forward)
    # logits_prev : last in-loop forward (-> softmax / labels_self_training), like the reference
    return ws, logits_prev


# --------------------------------------------------------------------------
# One sanitization step (whole per-perturbation body, jitted once).
# --------------------------------------------------------------------------
def _step_impl(adj_changes, thresh, lam, first,
               features, ori_adj, labels, train_mask, val_mask, test_mask,
               ws_init, attr_slab, *,
               temp, eta, beta, tau, lr, momentum, train_iters, nclass):
    f32 = jnp.float32
    n = ori_adj.shape[0]

    def diff_core(adj_changes_):
        sq = adj_changes_ - jnp.diag(jnp.diag(adj_changes_))
        symm = jnp.clip(sq + sq.T, -1.0, 1.0)
        modified = symm + ori_adj
        adj_norm = normalize_adj_jax(modified)
        adj_norm_bf16 = adj_norm.astype(jnp.bfloat16)   # bf16 (N,N) stream for GCN matmuls
        ws_final, logits_prev = inner_train_jax(adj_norm_bf16, features, labels, train_mask,
                                                ws_init, train_iters, lr, momentum)
        logits_final = gcn_forward_jax(adj_norm_bf16, features, ws_final)
        logp_final = jax.nn.log_softmax(logits_final, axis=1)
        smoother = feature_smoothing_jax(modified, features)
        return (logp_final, smoother), (logits_prev, modified)

    # single inner-train forward; backward pass deferred until the loss mask is known
    (logp_final, smoother), vjp_fn, (logits_prev, modified) = jax.vjp(
        diff_core, adj_changes, has_aux=True)

    # ---------------- anomaly-detection path (non-differentiable, Pallas) ----------------
    gcn_slab = softmax_slab(logits_prev, temp)                             # Pallas, (N, 2C+1)
    labels_self = jnp.argmax(logits_prev, axis=1)
    labels_self = jnp.where(train_mask > 0, labels, labels_self).astype(labels.dtype)

    packed = jnp.concatenate([gcn_slab, attr_slab, jnp.ones((n, 1), f32)], axis=1)
    modified_bf16 = modified.astype(jnp.bfloat16)                          # 0/1 values, exact
    stats = node_stats_fused(modified_bf16, packed, nclass)                # Pallas, (N, 8)
    deg = stats[:, 6]
    dec = jnp.nan_to_num(stats[:, :6], nan=0.0, posinf=0.0, neginf=0.0)
    dmin = dec.min(axis=0, keepdims=True)
    drange = dec.max(axis=0, keepdims=True) - dmin
    drange = jnp.where(drange == 0.0, 1.0, drange)
    # TODO(synk): DAGMM density model (Model + Adam training + compute_energy) not ported;
    # the summed min-max-scaled decision features stand in for the anomaly energy score.
    scores = ((dec - dmin) / drange).sum(axis=1)
    qua = jnp.quantile(scores, tau)
    thresh_new = jnp.where(first, qua, beta * qua + (1.0 - beta) * thresh)
    normal = (scores < thresh_new).astype(f32)                             # 1.0 = normal node
    test_nm = test_mask * normal
    val_nm = val_mask * normal
    # TODO(synk): roc_auc_score / contingency_matrix / accuracy_score diagnostics omitted
    # (sklearn; they do not affect the returned sanitized adjacency).

    # ---------------- meta-gradient: one backward pass through the bilevel graph --------
    oh_lab = jax.nn.one_hot(labels, nclass, dtype=f32)
    oh_self = jax.nn.one_hot(labels_self, nclass, dtype=f32)
    cot_logp = -(lam * val_nm[:, None] * oh_lab / jnp.sum(val_nm)
                 + (1.0 - lam) * test_nm[:, None] * oh_self / jnp.sum(test_nm))
    (adj_grad,) = vjp_fn((cot_logp.astype(logp_final.dtype),
                          jnp.asarray(eta, smoother.dtype)))

    # ---------------- sanitization: fused per-row reductions (Pallas) -------------------
    deg1 = (deg == 1.0).astype(f32)
    rbest, rcol, rmin = sanitize_and_select(adj_grad, modified_bf16, normal, deg1)
    m = jnp.min(rmin)                                    # global min(mg), reference min-shift
    vals = rbest[:, 0] - m                               # per-row best of (mg - min) (S == 1)
    row0 = jnp.argmax(vals)
    ok = vals[row0] > 0.0                                # otherwise reference argmax -> (0, 0)
    row = jnp.where(ok, row0, 0).astype(jnp.int32)
    col = jnp.where(ok, rcol[row0, 0], 0).astype(jnp.int32)
    delta = -2.0 * modified[row, col] + 1.0
    adj_changes = adj_changes.at[row, col].add(delta)
    adj_changes = adj_changes.at[col, row].add(delta)
    return adj_changes, thresh_new, smoother


# --------------------------------------------------------------------------
# FocusedCleaner.forward
# --------------------------------------------------------------------------
def focused_cleaner_forward(features, ori_adj, labels, train_mask, val_mask,
                            test_mask, w_init, perturbations, *, temp, eta,
                            beta, tau, lr, momentum, train_iters, nclass):
    f32 = jnp.float32
    n = ori_adj.shape[0]
    adj_changes = jnp.zeros((n, n), f32)
    lambda_lst = jnp.linspace(1.0, 0.0, perturbations)

    # Low-dimensional attributes via PCA (constant across the sanitization loop).
    # TODO(synk): sklearn PCA(random_state=6) solver/sign conventions not reproduced; SVD PCA used.
    xc = features - jnp.mean(features, axis=0, keepdims=True)
    _, _, vt = jnp.linalg.svd(xc, full_matrices=False)
    attr_dr = xc @ vt[:nclass].T
    attr_slab = softmax_slab(attr_dr, temp)                                # Pallas, (N, 2C+1)

    step = jax.jit(functools.partial(
        _step_impl, temp=float(temp), eta=float(eta), beta=float(beta), tau=float(tau),
        lr=float(lr), momentum=float(momentum), train_iters=int(train_iters),
        nclass=int(nclass)))

    thresh = jnp.asarray(0.0, f32)
    smoother_lst = []
    for i in range(perturbations):
        adj_changes, thresh, smoother = step(
            adj_changes, thresh, lambda_lst[i], jnp.asarray(i == 0),
            features, ori_adj, labels, train_mask, val_mask, test_mask,
            tuple(w_init), attr_slab)
        smoother_lst.append(smoother)          # smoother_lst bookkeeping (diagnostic only)

    adj_changes = adj_changes * (1.0 - jnp.eye(n, dtype=adj_changes.dtype))
    return adj_changes + ori_adj


# --------------------------------------------------------------------------
if __name__ == "__main__":
    key = jax.random.PRNGKey(0)
    N, F, H, C = 64, 32, 16, 4          # nnodes, nfeat, hidden_sizes=[16], nclass
    temp, eta, beta, tau = 1.0, 0.01, 0.5, 0.9
    lr, momentum, train_iters = 0.1, 0.9, 3
    perturbations = 2

    k_adj, k_feat, k_lab, k_w1, k_w2 = jax.random.split(key, 5)
    upper = (jax.random.uniform(k_adj, (N, N)) < 0.1).astype(jnp.float32)
    upper = jnp.triu(upper, k=1)
    ori_adj = upper + upper.T                                 # symmetric 0/1, no self-loops
    features = jax.random.normal(k_feat, (N, F), jnp.float32)
    labels = jax.random.randint(k_lab, (N,), 0, C)
    idx = jnp.arange(N)
    train_mask = (idx < N // 4).astype(jnp.float32)
    val_mask = ((idx >= N // 4) & (idx < N // 2)).astype(jnp.float32)
    test_mask = (idx >= N // 2).astype(jnp.float32)

    # deterministic weight init matching torch: uniform(-stdv, stdv), stdv = 1/sqrt(fan_out)
    stdv1 = 1.0 / (H ** 0.5)
    stdv2 = 1.0 / (C ** 0.5)
    w1 = jax.random.uniform(k_w1, (F, H), jnp.float32, -stdv1, stdv1)
    w2 = jax.random.uniform(k_w2, (H, C), jnp.float32, -stdv2, stdv2)
    w_init = [w1, w2]

    sanitized = focused_cleaner_forward(
        features, ori_adj, labels, train_mask, val_mask, test_mask,
        w_init, perturbations, temp=temp, eta=eta, beta=beta, tau=tau,
        lr=lr, momentum=momentum, train_iters=train_iters, nclass=C)
    jax.block_until_ready(sanitized)
    assert sanitized.shape == (N, N)
    print("KERNEL_OK")
</pallas_src>

<mosaic_0001>
module attributes {stable_mosaic.version = 11 : i64} {
  func.func @_softmax_slab_kernel(%arg0: i32, %arg1: memref<32x4xf32, #tpu.memory_space<vmem>>, %arg2: memref<32x9xf32, #tpu.memory_space<vmem>>) attributes {dimension_semantics = [#tpu.dimension_semantics<parallel>], iteration_bounds = array<i64: 2>, scalar_prefetch = 0 : i64, scratch_operands = 0 : i64, tpu.core_type = #tpu.core_type<tc>, window_params = [{transform_indices = @transform_0, window_bounds = array<i64: 32, 4>}, {transform_indices = @transform_1, window_bounds = array<i64: 32, 9>}]} {
    %c0 = arith.constant 0 : index
    %c0_0 = arith.constant 0 : index
    %0 = vector.load %arg1[%c0, %c0_0] : memref<32x4xf32, #tpu.memory_space<vmem>>, vector<32x4xf32>
    %cst = arith.constant 1.000000e+00 : f32
    %1 = vector.broadcast %cst : f32 to vector<32x4xf32>
    %2 = arith.mulf %0, %1 : vector<32x4xf32>
    %cst_1 = arith.constant dense<0xFF800000> : vector<32xf32>
    %3 = vector.multi_reduction <maximumf>, %2, %cst_1 [1] : vector<32x4xf32> to vector<32xf32>
    %4 = vector.shape_cast %3 : vector<32xf32> to vector<32x1xf32>
    %5 = vector.broadcast %4 : vector<32x1xf32> to vector<32x4xf32>
    %6 = arith.subf %2, %5 : vector<32x4xf32>
    %7 = math.exp %6 : vector<32x4xf32>
    %cst_2 = arith.constant dense<0.000000e+00> : vector<32xf32>
    %8 = vector.multi_reduction <add>, %7, %cst_2 [1] : vector<32x4xf32> to vector<32xf32>
    %9 = vector.shape_cast %8 : vector<32xf32> to vector<32x1xf32>
    %10 = math.log %9 : vector<32x1xf32>
    %11 = arith.addf %10, %4 : vector<32x1xf32>
    %12 = vector.broadcast %11 : vector<32x1xf32> to vector<32x4xf32>
    %13 = arith.subf %2, %12 : vector<32x4xf32>
    %14 = math.exp %13 : vector<32x4xf32>
    %c0_3 = arith.constant 0 : index
    %c0_4 = arith.constant 0 : index
    %15 = vector.load %arg2[%c0_3, %c0_4] : memref<32x9xf32, #tpu.memory_space<vmem>>, vector<32x4xf32>
    tpu.vector_store %arg2[%c0_3, %c0_4], %14 {strides = array<i32>} : memref<32x9xf32, #tpu.memory_space<vmem>>, vector<32x4xf32>,
    %c0_5 = arith.constant 0 : index
    %c4 = arith.constant 4 : index
    %16 = vector.load %arg2[%c0_5, %c4] : memref<32x9xf32, #tpu.memory_space<vmem>>, vector<32x4xf32>
    tpu.vector_store %arg2[%c0_5, %c4], %13 {strides = array<i32>} : memref<32x9xf32, #tpu.memory_space<vmem>>, vector<32x4xf32>,
    %17 = arith.mulf %14, %13 : vector<32x4xf32>
    %cst_6 = arith.constant dense<0.000000e+00> : vector<32xf32>
    %18 = vector.multi_reduction <add>, %17, %cst_6 [1] : vector<32x4xf32> to vector<32xf32>
    %19 = vector.shape_cast %18 : vector<32xf32> to vector<32x1xf32>
    %c0_7 = arith.constant 0 : index
    %c8 = arith.constant 8 : index
    %20 = vector.load %arg2[%c0_7, %c8] : memref<32x9xf32, #tpu.memory_space<vmem>>, vector<32x1xf32>
    tpu.vector_store %arg2[%c0_7, %c8], %19 {strides = array<i32>} : memref<32x9xf32, #tpu.memory_space<vmem>>, vector<32x1xf32>,
    return
  }
  func.func @transform_0(%arg0: i32) -> (i32, i32) {
    %c0_i32 = arith.constant 0 : i32
    %c0_i32_0 = arith.constant 0 : i32
    return %arg0, %c0_i32 : i32, i32
  }
  func.func @transform_1(%arg0: i32) -> (i32, i32) {
    %c0_i32 = arith.constant 0 : i32
    %c0_i32_0 = arith.constant 0 : i32
    return %arg0, %c0_i32 : i32, i32
  }
}

</mosaic_0001>

<bundles_post_ra>
// kernel: tpu_custom_call.1
= control target key start
LH: loop header
LB: loop body
LE: loop exit
PB: predicated region body
PF: predicated region fallthrough
CT: control target
= control target key end

     0   :  { %s350_s6 = smov 0   ;;  %s409_s0 = inlined_call_operand.vmem [shape: f32[64,4], index: 0, kind: input, shape index: {}]   ;;  %s410_s1 = inlined_call_operand.vmem [shape: f32[64,9], index: 1, kind: output, shape index: {}]  }
   0x1 LB: > { %s287_s7 = sadd.s32 4294967295, %s337_s6   ;;  %p291_p0 = scmp.ge.s32.totalorder %s337_s6, 1  ;;  %s337_s6 = sphi %s350_s6, %s11_s6  }
   0x2   : > { %p88_p1 = scmp.lt.s32.totalorder %s337_s6, 3 }
   0x4   : > { %p89_p2 = pnand %p291_p0, %p88_p1 }
   0x5   : > { %s292_s8 = sshll.u32 (!%p89_p2), %s287_s7, 2  ;;  %vm124_vm0 = vcmask (!%p89_p2), 31744   ;;  %s339_s16 = smov (!%p89_p2), 4   ;;  %vm205_vm1 = vcmask (!%p89_p2), 64544   ;;  %vm226_vm2 = vcmask (!%p89_p2), 72768  }
   0x6   : > { %92 = sbr.rel (%p89_p2) target bundleno = 560 (0x230), region = 24  ;;  %p109_p3 = scmp.lt.s32.totalorder (!%p89_p2), %s292_s8, 7 }
   0xd   : > { %s412_s8 = smov (!%p109_p3, %s292_s8), 7 }
   0xe   : > { %s293_s9 = sshll.u32 %s412_s8, 3 }
   0xf   : > { %s112_s12 = scalar_lea.vmem %s409_s0, %s293_s9  ;;  %s384_s15 = scalar_lea.vmem %s410_s1, %s293_s9 }
  0x10   : > { %v120_v0 = vld [vmem:[%s112_s12] sm:$0xff]  ;;  %v122_v1 = vld [vmem:[%s112_s12 + $0x10] sm:$0xff]  ;;  %v121_v2 = vld [vmem:[%s112_s12 + $0x8] sm:$0xff] }
  0x11   : > { %v125_v3 = vsel %vm124_vm0, %v120_v0, -inf  ;;  %v131_v4 = vsel %vm124_vm0, %v122_v1, -inf  ;;  %v368_v5 = vld [vmem:[%s112_s12 + $0x18] sm:$0xff]  ;;  %v128_v6 = vsel %vm124_vm0, %v121_v2, -inf }
  0x12   : > { %126 = vmax.xlane.f32.xlu0 %v125_v3  ;;  %132 = vmax.xlane.f32.xlu1 %v131_v4  ;;  %v134_v7 = vsel %vm124_vm0, %v368_v5, -inf }
  0x16   : > { %129 = vmax.xlane.f32.xlu0 %v128_v6  ;;  %135 = vmax.xlane.f32.xlu1 %v134_v7 }
  0x9f   : > { %v127_v8 = vpop.xlane.xlu0 %126  ;;  %v133_v9 = vpop.xlane.xlu1 %132 }
  0xa0   : > { %v137_v10 = vsub.f32 %v120_v0, %v127_v8  ;;  %v139_v11 = vsub.f32 %v122_v1, %v133_v9 }
  0xa2   : > { %v141_v12 = vmul.f32 1.442695, %v137_v10  ;;  %v145_v13 = vmul.f32 1.442695, %v139_v11 }
  0xa3   : > { %v130_v14 = vpop.xlane.xlu0 %129  ;;  %v136_v15 = vpop.xlane.xlu1 %135 }
  0xa4   : > { %307 = vpow2.f32 %v141_v12  ;;  %v138_v16 = vsub.f32 %v121_v2, %v130_v14  ;;  %v140_v17 = vsub.f32 %v368_v5, %v136_v15 }
  0xa5   : > { %309 = vpow2.f32 %v145_v13 }
  0xa6   : > { %v143_v18 = vmul.f32 1.442695, %v138_v16  ;;  %v147_v19 = vmul.f32 1.442695, %v140_v17 }
  0xa8   : > { %311 = vpow2.f32 %v143_v18 }
  0xa9   : > { %313 = vpow2.f32 %v147_v19 }
  0xae   : > { %v308_v20 = vpop.eup %307 }
  0xaf   : > { %v310_v21 = vpop.eup %309  ;;  %v149_v22 = vsel %vm124_vm0, %v308_v20, 0.0 }
  0xb0   : > { %150 = vadd.xlane.f32.xlu0 %v149_v22  ;;  %v155_v23 = vsel %vm124_vm0, %v310_v21, 0.0 }
  0xb2   : > { %v312_v24 = vpop.eup %311 }
  0xb3   : > { %v314_v25 = vpop.eup %313  ;;  %v152_v26 = vsel %vm124_vm0, %v312_v24, 0.0 }
  0xb4   : > { %156 = vadd.xlane.f32.xlu0 %v155_v23  ;;  %153 = vadd.xlane.f32.xlu1 %v152_v26  ;;  %v158_v27 = vsel %vm124_vm0, %v314_v25, 0.0 }
  0xb8   : > { %159 = vadd.xlane.f32.xlu1 %v158_v27 }
 0x13d   : > { %v151_v28 = vpop.xlane.xlu0 %150 }
 0x13e   : > { %315 = vlog2.f32 %v151_v28 }
 0x141   : > { %v154_v29 = vpop.xlane.xlu1 %153  ;;  %v157_v30 = vpop.xlane.xlu0 %156 }
 0x142   : > { %317 = vlog2.f32 %v154_v29 }
 0x143   : > { %319 = vlog2.f32 %v157_v30 }
 0x145   : > { %v160_v31 = vpop.xlane.xlu1 %159 }
 0x146   : > { %321 = vlog2.f32 %v160_v31 }
 0x148   : > { %v316_v32 = vpop.eup %315 }
 0x149   : > { %v162_v33 = vmul.f32 0.6931472, %v316_v32 }
 0x14b   : > { %v169_v34 = vadd.f32 %v162_v33, %v127_v8 }
 0x14c   : > { %v318_v35 = vpop.eup %317 }
 0x14d   : > { %v320_v36 = vpop.eup %319  ;;  %v164_v37 = vmul.f32 0.6931472, %v318_v35  ;;  %v173_v38 = vsub.f32 %v120_v0, %v169_v34 }
 0x14e   : > { %v166_v39 = vmul.f32 0.6931472, %v320_v36 }
 0x14f   : > { %v170_v40 = vadd.f32 %v164_v37, %v130_v14  ;;  %v177_v41 = vmul.f32 1.442695, %v173_v38 }
 0x150   : > { %v322_v42 = vpop.eup %321  ;;  %v171_v43 = vadd.f32 %v166_v39, %v133_v9 }
 0x151   : > { %v168_v44 = vmul.f32 0.6931472, %v322_v42  ;;  %323 = vpow2.f32 %v177_v41  ;;  %v174_v45 = vsub.f32 %v121_v2, %v170_v40 }
 0x152   : > { %v175_v46 = vsub.f32 %v122_v1, %v171_v43 }
 0x153   : > { %v172_v47 = vadd.f32 %v168_v44, %v136_v15  ;;  %v179_v48 = vmul.f32 1.442695, %v174_v45 }
 0x154   : > { %v181_v49 = vmul.f32 1.442695, %v175_v46 }
 0x155   : > { %325 = vpow2.f32 %v179_v48  ;;  %v176_v50 = vsub.f32 %v368_v5, %v172_v47 }
 0x156   : > { %327 = vpow2.f32 %v181_v49 }
 0x157   : > { %v183_v51 = vmul.f32 1.442695, %v176_v50 }
 0x159   : > { %329 = vpow2.f32 %v183_v51 }
 0x15b   : > { %v324_v52 = vpop.eup %323 }
 0x15c   : > { %v210_v53 = vmul.f32 %v324_v52, %v173_v38  ;;  %185 = vst.msk [vmem:[%s384_s15] sm:$0xff] %vm124_vm0, %v324_v52 }
 0x15e   : > { %v214_v54 = vsel %vm124_vm0, %v210_v53, 0.0 }
 0x15f   : > { %v326_v55 = vpop.eup %325  ;;  %215 = vadd.xlane.f32.xlu0 %v214_v54 }
 0x160   : > { %v328_v56 = vpop.eup %327  ;;  %v211_v57 = vmul.f32 %v326_v55, %v174_v45  ;;  %186 = vst.msk [vmem:[%s384_s15 + $0x8] sm:$0xff] %vm124_vm0, %v326_v55 }
 0x161   : > { %v212_v58 = vmul.f32 %v328_v56, %v175_v46  ;;  %187 = vst.msk [vmem:[%s384_s15 + $0x10] sm:$0xff] %vm124_vm0, %v328_v56 }
 0x162   : > { %v217_v59 = vsel %vm124_vm0, %v211_v57, 0.0 }
 0x163   : > { %v330_v60 = vpop.eup %329  ;;  %218 = vadd.xlane.f32.xlu1 %v217_v59  ;;  %v220_v61 = vsel %vm124_vm0, %v212_v58, 0.0 }
 0x164   : > { %221 = vadd.xlane.f32.xlu0 %v220_v61  ;;  %188 = vst.msk [vmem:[%s384_s15 + $0x18] sm:$0xff] %vm124_vm0, %v330_v60  ;;  %v213_v62 = vmul.f32 %v330_v60, %v176_v50 }
 0x166   : > { %v223_v63 = vsel %vm124_vm0, %v213_v62, 0.0 }
 0x174   : > { %195 = vrot.lane.b32.xlu1 %v174_v45, %s339_s16 }
 0x178   : > { %197 = vrot.lane.b32.xlu1 %v175_v46, %s339_s16 }
 0x17a   : > { %193 = vrot.lane.b32.xlu0 %v173_v38, %s339_s16 }
 0x19c   : > { %224 = vadd.xlane.f32.xlu1 %v223_v63 }
 0x1ad   : > { %199 = vrot.lane.b32.xlu1 %v176_v50, %s339_s16 }
 0x1ec   : > { %v216_v0 = vpop.xlane.xlu0 %215 }
 0x1f0   : > { %v219_v1 = vpop.xlane.xlu1 %218 }
 0x1f1   : > { %v222_v2 = vpop.xlane.xlu0 %221 }
 0x1f4   : > { %v196_v3 = vpop.permute.xlu1 %195 }
 0x1f5   : > { %v194_v4 = vpop.permute.xlu0 %193  ;;  %207 = vst.msk [vmem:[%s384_s15 + $0x8] sm:$0xff] %vm205_vm1, %v196_v3 }
 0x1f6   : > { %206 = vst.msk [vmem:[%s384_s15] sm:$0xff] %vm205_vm1, %v194_v4 }
 0x1f7   : > { %227 = vst.msk [vmem:[%s384_s15] sm:$0xff] %vm226_vm2, %v216_v0  ;;  %228 = vst.msk [vmem:[%s384_s15 + $0x8] sm:$0xff] %vm226_vm2, %v219_v1 }
 0x1f8   : > { %v198_v5 = vpop.permute.xlu1 %197 }
 0x1f9   : > { %208 = vst.msk [vmem:[%s384_s15 + $0x10] sm:$0xff] %vm205_vm1, %v198_v5 }
 0x1fa   : > { %229 = vst.msk [vmem:[%s384_s15 + $0x10] sm:$0xff] %vm226_vm2, %v222_v2 }
 0x229   : > { %v225_v6 = vpop.xlane.xlu1 %224 }
 0x22d   : > { %v200_v7 = vpop.permute.xlu1 %199 }
 0x22e   : > { %209 = vst.msk [vmem:[%s384_s15 + $0x18] sm:$0xff] %vm205_vm1, %v200_v7 }
 0x22f   : > { %230 = vst.msk [vmem:[%s384_s15 + $0x18] sm:$0xff] %vm226_vm2, %v225_v6 }
 0x230 PF: > { %s11_s6 = sadd.s32 1, %s337_s6  }
 0x231   : > { %p8_p4 = scmp.ge.s32.totalorder %s11_s6, 4  }
 0x233   :  { %10 = sbr.rel (!%p8_p4) target bundleno = 1 (0x1), region = 54 }

</bundles_post_ra>
